<compile_context>
chip_gen: v5e
topology: v5e:2x2
jax: 0.10.0
libtpu: 0.0.40
codegen_flags: <defaults>
</compile_context>

<pallas_src>
import math
from functools import partial

import jax
import jax.numpy as jnp
import numpy as np
from jax import lax
from jax.experimental import pallas as pl
from jax.experimental.pallas import tpu as pltpu

_PAD = 4           # causal left pad of the k=5 conv  (F.pad(score, (4, 0)))
_HALO = 8          # rows of previous-tile h carried across T tiles (>= _PAD, f32 sublane aligned)
_T_TILE_CANDS = (2048, 1024, 512, 256, 128)
_MAX_ROWS = 4096   # cap on rows per grid step for the batched small-T path


def _round_up(x, m):
    return (x + m - 1) // m * m


def _vmem_phys_bytes():
    try:
        info = pltpu.get_tpu_info()
        v = getattr(info, "vmem_capacity_bytes", None)
        if v:
            return min(max(int(v), 32 << 20), 128 << 20)
    except Exception:
        pass
    return 64 << 20   # conservative default (v7x per-core VMEM)


def _est_vmem_bytes(rows, feat):
    """Rough per-grid-step VMEM working set for `rows` time steps."""
    est = rows * feat * 4 * 2                                    # f32 x block, double-buffered
    est += feat * 512 * 2 * 2                                    # w1 bf16, double-buffered
    est += (512 * 128 + 128 * 64 + 64 * 32 + 5 * 32) * 2 * 2     # remaining weights (bf16)
    est += (512 + 128 + 64 + 32 + 128) * 4 * 2                   # biases (lane-padded)
    est += rows * (512 + 128 + 64 + 32) * 6                      # f32 intermediates + bf16 copies
    est += rows * 5 * 4 * 2 + rows * 4 * 2                       # conv rows + output
    return int(est * 1.25) + (2 << 20)


def _vmem_limit(est):
    phys = _vmem_phys_bytes()
    return min(phys, max(int(est * 1.4) + (4 << 20), 32 << 20))


# --------------------------------------------------------------------------
# Kernel bodies
# --------------------------------------------------------------------------

def _mlp_chain(x_bf16, w1_ref, b1_ref, w2_ref, b2_ref, w3_ref, b3_ref,
               w4_ref, b4_ref):
    """conv1d1 -> conv1d2 -> approximator (all k=1): bf16 MXU matmuls, f32 acc."""
    h = jnp.maximum(jnp.dot(x_bf16, w1_ref[...],
                            preferred_element_type=jnp.float32) + b1_ref[...], 0.0)
    h = jnp.maximum(jnp.dot(h.astype(jnp.bfloat16), w2_ref[...],
                            preferred_element_type=jnp.float32) + b2_ref[...], 0.0)
    h = jnp.maximum(jnp.dot(h.astype(jnp.bfloat16), w3_ref[...],
                            preferred_element_type=jnp.float32) + b3_ref[...], 0.0)
    h = jnp.maximum(jnp.dot(h.astype(jnp.bfloat16), w4_ref[...],
                            preferred_element_type=jnp.float32) + b4_ref[...], 0.0)
    return h          # (rows, 32) float32


def _make_batched_kernel(R, T):
    """One grid step = B_blk whole sequences (R = B_blk * T rows)."""
    def kernel(pos_ref, x_ref, w1_ref, b1_ref, w2_ref, b2_ref, w3_ref, b3_ref,
               w4_ref, b4_ref, w5t_ref, b5_ref, o_ref):
        x = x_ref[...].astype(jnp.bfloat16)                    # (R, F) cast in-kernel
        h = _mlp_chain(x, w1_ref, b1_ref, w2_ref, b2_ref,
                       w3_ref, b3_ref, w4_ref, b4_ref)         # (R, 32) f32
        hb = h.astype(jnp.bfloat16)

        # s_rows[k, r] = sum_c w5[c, k] * h[r, c]   (lane-dense row form)
        s_rows = lax.dot_general(
            w5t_ref[...], hb,
            dimension_numbers=(((1,), (1,)), ((), ())),
            preferred_element_type=jnp.float32)                # (5, R)

        # causal k=5 conv; zero-padded per sequence of length T.
        pos = pos_ref[...]                                     # (1, R) int32, index in sequence
        s_pad = jnp.concatenate(
            [jnp.zeros((5, _PAD), jnp.float32), s_rows], axis=1)   # (5, R + 4)

        acc = s_rows[_PAD:_PAD + 1, :]                         # k = 4 term (no shift)
        for k in range(_PAD):
            d = _PAD - k
            contrib = s_pad[k:k + 1, k:k + R]                  # = s_rows[k, i - d], 0 for i < d
            acc = acc + jnp.where(pos >= d, contrib, 0.0)      # mask cross-sequence leakage

        o_ref[...] = jax.nn.sigmoid(acc + b5_ref[...])         # lane-dense (1, R) store
    return kernel


def _make_tiled_kernel(T_tile, num_t):
    """One grid step = one (batch, T-tile); 8-row h halo carried across T tiles."""
    def kernel(x_ref, w1_ref, b1_ref, w2_ref, b2_ref, w3_ref, b3_ref,
               w4_ref, b4_ref, w5t_ref, b5_ref, o_ref, halo_ref):
        t = pl.program_id(1)

        @pl.when(t == 0)
        def _():
            halo_ref[...] = jnp.zeros_like(halo_ref)           # new sequence: zero causal pad

        x = x_ref[0].astype(jnp.bfloat16)                      # (T_tile, F) cast in-kernel
        h = _mlp_chain(x, w1_ref, b1_ref, w2_ref, b2_ref,
                       w3_ref, b3_ref, w4_ref, b4_ref)         # (T_tile, 32) f32

        # Prepend the carried halo (only 8 rows live in VMEM scratch; no full-tile
        # store->load round trip).  Rows [0:4] of the halo are never read.
        h_full = jnp.concatenate([halo_ref[...], h],
                                 axis=0).astype(jnp.bfloat16)  # (T_tile + 8, 32)

        s_rows = lax.dot_general(
            w5t_ref[...], h_full,
            dimension_numbers=(((1,), (1,)), ((), ())),
            preferred_element_type=jnp.float32)                # (5, T_tile + 8)

        # out[i] = b5 + sum_k s(t0 + i - 4 + k, k)  ->  4 shifted adds
        acc = s_rows[0:1, _PAD:_PAD + T_tile]
        for k in range(1, 5):
            acc = acc + s_rows[k:k + 1, _PAD + k:_PAD + k + T_tile]

        o_ref[0] = jax.nn.sigmoid(acc + b5_ref[...])           # lane-dense (1, T_tile) store

        if num_t > 1:
            # Carry the last 8 rows of h (only the last 4 are ever read next tile).
            halo_ref[...] = h[T_tile - _HALO:T_tile, :]
    return kernel


# --------------------------------------------------------------------------
# Wrappers
# --------------------------------------------------------------------------

def _pick_b_blk(B, T, F, budget):
    """How many whole sequences per grid step (batched path); None if T too big."""
    step = 8 // math.gcd(T, 8)              # keep rows % 8 == 0
    if step * T > _MAX_ROWS or _est_vmem_bytes(step * T, F) > budget:
        return None
    hi = min(_round_up(B, step), max((_MAX_ROWS // T) // step * step, step))
    b = step
    while b + step <= hi and _est_vmem_bytes((b + step) * T, F) <= budget:
        b += step
    return b


def _pick_t_tile(T, F, budget, cap=None):
    cap = cap or _T_TILE_CANDS[0]
    cands = [c for c in _T_TILE_CANDS if c <= cap] or [_T_TILE_CANDS[-1]]
    feasible = [c for c in cands if _est_vmem_bytes(c, F) <= budget] or [cands[-1]]
    # prefer minimal padded length, then the largest tile
    return min(feasible, key=lambda c: (_round_up(T, c), -c))


def _rapn_batched(x, wb, B_blk):
    B, T, F = x.shape
    w1b, b1, w2b, b2, w3b, b3, w4b, b4, w5tb, b5 = wb

    B_pad = _round_up(B, B_blk)
    if B_pad != B:
        x = jnp.pad(x, ((0, B_pad - B), (0, 0), (0, 0)))
    R = B_blk * T
    nb = B_pad // B_blk
    x_flat = x.reshape(B_pad * T, F)                      # metadata-only reshape
    pos = (jnp.arange(R, dtype=jnp.int32) % T).reshape(1, R)

    def const_spec(arr):
        z = (0,) * arr.ndim
        return pl.BlockSpec(arr.shape, lambda i, _z=z: _z)

    out = pl.pallas_call(
        _make_batched_kernel(R, T),
        out_shape=jax.ShapeDtypeStruct((nb, R), jnp.float32),
        grid=(nb,),
        in_specs=[const_spec(pos),
                  pl.BlockSpec((R, F), lambda i: (i, 0)),
                  const_spec(w1b), const_spec(b1),
                  const_spec(w2b), const_spec(b2),
                  const_spec(w3b), const_spec(b3),
                  const_spec(w4b), const_spec(b4),
                  const_spec(w5tb), const_spec(b5)],
        out_specs=pl.BlockSpec((1, R), lambda i: (i, 0)),
        compiler_params=pltpu.CompilerParams(
            dimension_semantics=("parallel",),
            vmem_limit_bytes=_vmem_limit(_est_vmem_bytes(R, F))),
    )(pos, x_flat, w1b, b1, w2b, b2, w3b, b3, w4b, b4, w5tb, b5)
    return out.reshape(B_pad, T)[:B]


def _rapn_tiled(x, wb, T_tile):
    B, T, F = x.shape
    w1b, b1, w2b, b2, w3b, b3, w4b, b4, w5tb, b5 = wb

    T_pad = _round_up(T, T_tile)
    if T_pad != T:
        x = jnp.pad(x, ((0, 0), (0, T_pad - T), (0, 0)))
    num_t = T_pad // T_tile

    def const_spec(arr):
        z = (0,) * arr.ndim
        return pl.BlockSpec(arr.shape, lambda b, t, _z=z: _z)

    out = pl.pallas_call(
        _make_tiled_kernel(T_tile, num_t),
        out_shape=jax.ShapeDtypeStruct((B, 1, T_pad), jnp.float32),
        grid=(B, num_t),
        in_specs=[pl.BlockSpec((1, T_tile, F), lambda b, t: (b, t, 0)),
                  const_spec(w1b), const_spec(b1),
                  const_spec(w2b), const_spec(b2),
                  const_spec(w3b), const_spec(b3),
                  const_spec(w4b), const_spec(b4),
                  const_spec(w5tb), const_spec(b5)],
        out_specs=pl.BlockSpec((1, 1, T_tile), lambda b, t: (b, 0, t)),
        scratch_shapes=[pltpu.VMEM((_HALO, 32), jnp.float32)],
        compiler_params=pltpu.CompilerParams(
            dimension_semantics=("parallel", "arbitrary"),
            vmem_limit_bytes=_vmem_limit(_est_vmem_bytes(T_tile, F))),
    )(x, w1b, b1, w2b, b2, w3b, b3, w4b, b4, w5tb, b5)
    return out[:, 0, :T]


@partial(jax.jit, static_argnames=("t_tile_cap", "force_tiled"))
def rapn_score(x, params, t_tile_cap=None, force_tiled=False):
    """RAPN forward, isTrain=False: x (B, T, F) float32 -> sigmoid scores (B, T)."""
    B, T, F = x.shape
    w1, b1, w2, b2, w3, b3, w4, b4, w5t, b5 = params
    wb = (w1.astype(jnp.bfloat16), b1, w2.astype(jnp.bfloat16), b2,
          w3.astype(jnp.bfloat16), b3, w4.astype(jnp.bfloat16), b4,
          w5t.astype(jnp.bfloat16), b5)

    budget = min(_vmem_phys_bytes(), 128 << 20) * 5 // 8

    if not force_tiled:
        b_blk = _pick_b_blk(B, T, F, budget)
        if b_blk is not None:
            return _rapn_batched(x, wb, b_blk)

    t_tile = _pick_t_tile(T, F, budget, cap=t_tile_cap)
    return _rapn_tiled(x, wb, t_tile)
    # TODO(synk): for B == 1 on 2-TC chips (v7x), the T axis could be split
    # across cores with a 4-row halo recompute; not implemented.


# --------------------------------------------------------------------------
# Params + pure-JAX reference
# --------------------------------------------------------------------------

def init_params(key, feature_dim):
    """PyTorch-default-style (uniform) Conv1d params (deterministic)."""
    def conv_k1(k, cin, cout):
        kw, kb = jax.random.split(k)
        bound = 1.0 / np.sqrt(cin)
        w = jax.random.uniform(kw, (cin, cout), jnp.float32, -bound, bound)
        b = jax.random.uniform(kb, (1, cout), jnp.float32, -bound, bound)
        return w, b

    ks = jax.random.split(key, 5)
    w1, b1 = conv_k1(ks[0], feature_dim, 512)   # conv1d1
    w2, b2 = conv_k1(ks[1], 512, 128)           # conv1d2
    w3, b3 = conv_k1(ks[2], 128, 64)            # approximator[0]
    w4, b4 = conv_k1(ks[3], 64, 32)             # approximator[2]
    kw, kb = jax.random.split(ks[4])
    bound = 1.0 / np.sqrt(32 * 5)
    w5t = jax.random.uniform(kw, (5, 32), jnp.float32, -bound, bound)  # conv1d_approximator (k, cin)
    b5 = jax.random.uniform(kb, (1, 1), jnp.float32, -bound, bound)
    return (w1, b1, w2, b2, w3, b3, w4, b4, w5t, b5)


def rapn_score_reference(x, params, mixed=False):
    """Pure-JAX reference.  mixed=True mirrors the kernel's bf16 matmul inputs."""
    w1, b1, w2, b2, w3, b3, w4, b4, w5t, b5 = params
    cast = (lambda a: a.astype(jnp.bfloat16)) if mixed else (lambda a: a)

    def mm(a, w):
        return jnp.einsum('btf,fc->btc', cast(a), cast(w),
                          preferred_element_type=jnp.float32)

    h = jnp.maximum(mm(x, w1) + b1, 0.0)
    h = jnp.maximum(mm(h, w2) + b2, 0.0)
    h = jnp.maximum(mm(h, w3) + b3, 0.0)
    h = jnp.maximum(mm(h, w4) + b4, 0.0)
    s = jnp.einsum('btc,kc->btk', cast(h), cast(w5t),
                   preferred_element_type=jnp.float32)        # (B, T, 5)
    T = x.shape[1]
    s_pad = jnp.pad(s, ((0, 0), (4, 0), (0, 0)))
    logits = sum(s_pad[:, k:k + T, k] for k in range(5)) + b5[0, 0]
    return jax.nn.sigmoid(logits)


if __name__ == "__main__":
    key = jax.random.PRNGKey(0)
    k_par, k_nor, k_abn, k_long = jax.random.split(key, 4)

    # Small shapes consistent with RAPN snippet-level inputs.
    B, T, F = 2, 16, 64
    params = init_params(k_par, F)
    ref_nor = jax.random.normal(k_nor, (B, T, F), jnp.float32)
    ref_abn = jax.random.normal(k_abn, (B, T, F), jnp.float32)

    # Batched small-T path.
    score_nor = jax.block_until_ready(rapn_score(ref_nor, params))
    score_abn = jax.block_until_ready(rapn_score(ref_abn, params))
    assert score_nor.shape == (B, T) and score_abn.shape == (B, T)

    # Tight check vs a reference with the same bf16-operand / f32-accum policy.
    exp_nor_mixed = rapn_score_reference(ref_nor, params, mixed=True)
    np.testing.assert_allclose(np.asarray(score_nor), np.asarray(exp_nor_mixed),
                               rtol=0, atol=2e-3)
    # Loose check vs the full-f32 reference.
    exp_nor_f32 = rapn_score_reference(ref_nor, params, mixed=False)
    exp_abn_f32 = rapn_score_reference(ref_abn, params, mixed=False)
    np.testing.assert_allclose(np.asarray(score_nor), np.asarray(exp_nor_f32),
                               rtol=0, atol=3e-2)
    np.testing.assert_allclose(np.asarray(score_abn), np.asarray(exp_abn_f32),
                               rtol=0, atol=3e-2)

    # Long-sequence path: tiled T axis with causal-halo carry and tail padding.
    T_long = 300
    x_long = jax.random.normal(k_long, (1, T_long, F), jnp.float32)
    score_long = jax.block_until_ready(
        rapn_score(x_long, params, t_tile_cap=128, force_tiled=True))
    assert score_long.shape == (1, T_long)
    exp_long = rapn_score_reference(x_long, params, mixed=True)
    np.testing.assert_allclose(np.asarray(score_long), np.asarray(exp_long),
                               rtol=0, atol=2e-3)

    print("KERNEL_OK")
</pallas_src>

<mosaic_0001>
module attributes {stable_mosaic.version = 11 : i64} {
  func.func @kernel(%arg0: i32, %arg1: memref<1x32xi32, #tpu.memory_space<vmem>>, %arg2: memref<32x64xf32, #tpu.memory_space<vmem>>, %arg3: memref<64x512xbf16, #tpu.memory_space<vmem>>, %arg4: memref<1x512xf32, #tpu.memory_space<vmem>>, %arg5: memref<512x128xbf16, #tpu.memory_space<vmem>>, %arg6: memref<1x128xf32, #tpu.memory_space<vmem>>, %arg7: memref<128x64xbf16, #tpu.memory_space<vmem>>, %arg8: memref<1x64xf32, #tpu.memory_space<vmem>>, %arg9: memref<64x32xbf16, #tpu.memory_space<vmem>>, %arg10: memref<1x32xf32, #tpu.memory_space<vmem>>, %arg11: memref<5x32xbf16, #tpu.memory_space<vmem>>, %arg12: memref<1x1xf32, #tpu.memory_space<vmem>>, %arg13: memref<1x32xf32, #tpu.memory_space<vmem>>) attributes {dimension_semantics = [#tpu.dimension_semantics<parallel>], iteration_bounds = array<i64: 1>, scalar_prefetch = 0 : i64, scratch_operands = 0 : i64, tpu.core_type = #tpu.core_type<tc>, window_params = [{pipeline_mode = #tpu.pipeline_mode<synchronous>, transform_indices = @transform_0, window_bounds = array<i64: 1, 32>}, {transform_indices = @transform_1, window_bounds = array<i64: 32, 64>}, {pipeline_mode = #tpu.pipeline_mode<synchronous>, transform_indices = @transform_2, window_bounds = array<i64: 64, 512>}, {pipeline_mode = #tpu.pipeline_mode<synchronous>, transform_indices = @transform_3, window_bounds = array<i64: 1, 512>}, {pipeline_mode = #tpu.pipeline_mode<synchronous>, transform_indices = @transform_4, window_bounds = array<i64: 512, 128>}, {pipeline_mode = #tpu.pipeline_mode<synchronous>, transform_indices = @transform_5, window_bounds = array<i64: 1, 128>}, {pipeline_mode = #tpu.pipeline_mode<synchronous>, transform_indices = @transform_6, window_bounds = array<i64: 128, 64>}, {pipeline_mode = #tpu.pipeline_mode<synchronous>, transform_indices = @transform_7, window_bounds = array<i64: 1, 64>}, {pipeline_mode = #tpu.pipeline_mode<synchronous>, transform_indices = @transform_8, window_bounds = array<i64: 64, 32>}, {pipeline_mode = #tpu.pipeline_mode<synchronous>, transform_indices = @transform_9, window_bounds = array<i64: 1, 32>}, {pipeline_mode = #tpu.pipeline_mode<synchronous>, transform_indices = @transform_10, window_bounds = array<i64: 5, 32>}, {pipeline_mode = #tpu.pipeline_mode<synchronous>, transform_indices = @transform_11, window_bounds = array<i64: 1, 1>}, {transform_indices = @transform_12, window_bounds = array<i64: 1, 32>}]} {
    %c0 = arith.constant 0 : index
    %c0_0 = arith.constant 0 : index
    %0 = vector.load %arg2[%c0, %c0_0] : memref<32x64xf32, #tpu.memory_space<vmem>>, vector<32x64xf32>
    %1 = arith.truncf %0 : vector<32x64xf32> to vector<32x64xbf16>
    %c0_1 = arith.constant 0 : index
    %c0_2 = arith.constant 0 : index
    %2 = vector.load %arg3[%c0_1, %c0_2] : memref<64x512xbf16, #tpu.memory_space<vmem>>, vector<64x512xbf16>
    %cst = arith.constant dense<0.000000e+00> : vector<32x512xf32>
    %3 = tpu.matmul %1, %2, %cst {dimension_numbers = #tpu.dot_dimension_numbers<[1], [0], [0], [1], [0, 0, 1, 1], [], []>} : vector<32x64xbf16>, vector<64x512xbf16>, vector<32x512xf32> -> vector<32x512xf32>
    %c0_3 = arith.constant 0 : index
    %c0_4 = arith.constant 0 : index
    %4 = vector.load %arg4[%c0_3, %c0_4] : memref<1x512xf32, #tpu.memory_space<vmem>>, vector<1x512xf32>
    %5 = vector.broadcast %4 : vector<1x512xf32> to vector<32x512xf32>
    %6 = arith.addf %3, %5 : vector<32x512xf32>
    %cst_5 = arith.constant 0.000000e+00 : f32
    %7 = vector.broadcast %cst_5 : f32 to vector<32x512xf32>
    %8 = arith.maximumf %6, %7 : vector<32x512xf32>
    %9 = arith.truncf %8 : vector<32x512xf32> to vector<32x512xbf16>
    %c0_6 = arith.constant 0 : index
    %c0_7 = arith.constant 0 : index
    %10 = vector.load %arg5[%c0_6, %c0_7] : memref<512x128xbf16, #tpu.memory_space<vmem>>, vector<512x128xbf16>
    %cst_8 = arith.constant dense<0.000000e+00> : vector<32x128xf32>
    %11 = tpu.matmul %9, %10, %cst_8 {dimension_numbers = #tpu.dot_dimension_numbers<[1], [0], [0], [1], [0, 0, 1, 1], [], []>} : vector<32x512xbf16>, vector<512x128xbf16>, vector<32x128xf32> -> vector<32x128xf32>
    %c0_9 = arith.constant 0 : index
    %c0_10 = arith.constant 0 : index
    %12 = vector.load %arg6[%c0_9, %c0_10] : memref<1x128xf32, #tpu.memory_space<vmem>>, vector<1x128xf32>
    %13 = vector.broadcast %12 : vector<1x128xf32> to vector<32x128xf32>
    %14 = arith.addf %11, %13 : vector<32x128xf32>
    %cst_11 = arith.constant 0.000000e+00 : f32
    %15 = vector.broadcast %cst_11 : f32 to vector<32x128xf32>
    %16 = arith.maximumf %14, %15 : vector<32x128xf32>
    %17 = arith.truncf %16 : vector<32x128xf32> to vector<32x128xbf16>
    %c0_12 = arith.constant 0 : index
    %c0_13 = arith.constant 0 : index
    %18 = vector.load %arg7[%c0_12, %c0_13] : memref<128x64xbf16, #tpu.memory_space<vmem>>, vector<128x64xbf16>
    %cst_14 = arith.constant dense<0.000000e+00> : vector<32x64xf32>
    %19 = tpu.matmul %17, %18, %cst_14 {dimension_numbers = #tpu.dot_dimension_numbers<[1], [0], [0], [1], [0, 0, 1, 1], [], []>} : vector<32x128xbf16>, vector<128x64xbf16>, vector<32x64xf32> -> vector<32x64xf32>
    %c0_15 = arith.constant 0 : index
    %c0_16 = arith.constant 0 : index
    %20 = vector.load %arg8[%c0_15, %c0_16] : memref<1x64xf32, #tpu.memory_space<vmem>>, vector<1x64xf32>
    %21 = vector.broadcast %20 : vector<1x64xf32> to vector<32x64xf32>
    %22 = arith.addf %19, %21 : vector<32x64xf32>
    %cst_17 = arith.constant 0.000000e+00 : f32
    %23 = vector.broadcast %cst_17 : f32 to vector<32x64xf32>
    %24 = arith.maximumf %22, %23 : vector<32x64xf32>
    %25 = arith.truncf %24 : vector<32x64xf32> to vector<32x64xbf16>
    %c0_18 = arith.constant 0 : index
    %c0_19 = arith.constant 0 : index
    %26 = vector.load %arg9[%c0_18, %c0_19] : memref<64x32xbf16, #tpu.memory_space<vmem>>, vector<64x32xbf16>
    %cst_20 = arith.constant dense<0.000000e+00> : vector<32x32xf32>
    %27 = tpu.matmul %25, %26, %cst_20 {dimension_numbers = #tpu.dot_dimension_numbers<[1], [0], [0], [1], [0, 0, 1, 1], [], []>} : vector<32x64xbf16>, vector<64x32xbf16>, vector<32x32xf32> -> vector<32x32xf32>
    %c0_21 = arith.constant 0 : index
    %c0_22 = arith.constant 0 : index
    %28 = vector.load %arg10[%c0_21, %c0_22] : memref<1x32xf32, #tpu.memory_space<vmem>>, vector<1x32xf32>
    %29 = vector.broadcast %28 : vector<1x32xf32> to vector<32x32xf32>
    %30 = arith.addf %27, %29 : vector<32x32xf32>
    %cst_23 = arith.constant 0.000000e+00 : f32
    %31 = vector.broadcast %cst_23 : f32 to vector<32x32xf32>
    %32 = arith.maximumf %30, %31 : vector<32x32xf32>
    %33 = arith.truncf %32 : vector<32x32xf32> to vector<32x32xbf16>
    %c0_24 = arith.constant 0 : index
    %c0_25 = arith.constant 0 : index
    %34 = vector.load %arg11[%c0_24, %c0_25] : memref<5x32xbf16, #tpu.memory_space<vmem>>, vector<5x32xbf16>
    %cst_26 = arith.constant dense<0.000000e+00> : vector<5x32xf32>
    %35 = tpu.matmul %34, %33, %cst_26 {dimension_numbers = #tpu.dot_dimension_numbers<[1], [1], [0], [0], [0, 0, 1, 0], [], []>} : vector<5x32xbf16>, vector<32x32xbf16>, vector<5x32xf32> -> vector<5x32xf32>
    %c0_27 = arith.constant 0 : index
    %c0_28 = arith.constant 0 : index
    %36 = vector.load %arg1[%c0_27, %c0_28] : memref<1x32xi32, #tpu.memory_space<vmem>>, vector<1x32xi32>
    %cst_29 = arith.constant 0.000000e+00 : f32
    %37 = vector.broadcast %cst_29 : f32 to vector<5x4xf32>
    %38 = tpu.concatenate %37, %35 in 1 : vector<5x4xf32>, vector<5x32xf32> -> vector<5x36xf32>
    %39 = vector.extract_strided_slice %35 {offsets = [4, 0], sizes = [1, 32], strides = [1, 1]} : vector<5x32xf32> to vector<1x32xf32>
    %40 = vector.extract_strided_slice %38 {offsets = [0, 0], sizes = [1, 32], strides = [1, 1]} : vector<5x36xf32> to vector<1x32xf32>
    %c4_i32 = arith.constant 4 : i32
    %41 = vector.broadcast %c4_i32 : i32 to vector<1x32xi32>
    %42 = arith.cmpi sge, %36, %41 : vector<1x32xi32>
    %cst_30 = arith.constant 0.000000e+00 : f32
    %43 = vector.broadcast %cst_30 : f32 to vector<1x32xf32>
    %44 = arith.select %42, %40, %43 : vector<1x32xi1>, vector<1x32xf32>
    %45 = arith.addf %39, %44 : vector<1x32xf32>
    %46 = vector.extract_strided_slice %38 {offsets = [1, 1], sizes = [1, 32], strides = [1, 1]} : vector<5x36xf32> to vector<1x32xf32>
    %c3_i32 = arith.constant 3 : i32
    %47 = vector.broadcast %c3_i32 : i32 to vector<1x32xi32>
    %48 = arith.cmpi sge, %36, %47 : vector<1x32xi32>
    %cst_31 = arith.constant 0.000000e+00 : f32
    %49 = vector.broadcast %cst_31 : f32 to vector<1x32xf32>
    %50 = arith.select %48, %46, %49 : vector<1x32xi1>, vector<1x32xf32>
    %51 = arith.addf %45, %50 : vector<1x32xf32>
    %52 = vector.extract_strided_slice %38 {offsets = [2, 2], sizes = [1, 32], strides = [1, 1]} : vector<5x36xf32> to vector<1x32xf32>
    %c2_i32 = arith.constant 2 : i32
    %53 = vector.broadcast %c2_i32 : i32 to vector<1x32xi32>
    %54 = arith.cmpi sge, %36, %53 : vector<1x32xi32>
    %cst_32 = arith.constant 0.000000e+00 : f32
    %55 = vector.broadcast %cst_32 : f32 to vector<1x32xf32>
    %56 = arith.select %54, %52, %55 : vector<1x32xi1>, vector<1x32xf32>
    %57 = arith.addf %51, %56 : vector<1x32xf32>
    %58 = vector.extract_strided_slice %38 {offsets = [3, 3], sizes = [1, 32], strides = [1, 1]} : vector<5x36xf32> to vector<1x32xf32>
    %c1_i32 = arith.constant 1 : i32
    %59 = vector.broadcast %c1_i32 : i32 to vector<1x32xi32>
    %60 = arith.cmpi sge, %36, %59 : vector<1x32xi32>
    %cst_33 = arith.constant 0.000000e+00 : f32
    %61 = vector.broadcast %cst_33 : f32 to vector<1x32xf32>
    %62 = arith.select %60, %58, %61 : vector<1x32xi1>, vector<1x32xf32>
    %63 = arith.addf %57, %62 : vector<1x32xf32>
    %c0_34 = arith.constant 0 : index
    %c0_35 = arith.constant 0 : index
    %64 = vector.load %arg12[%c0_34, %c0_35] : memref<1x1xf32, #tpu.memory_space<vmem>>, vector<1x1xf32>
    %65 = vector.broadcast %64 : vector<1x1xf32> to vector<1x32xf32>
    %66 = arith.addf %63, %65 : vector<1x32xf32>
    %67 = arith.negf %66 : vector<1x32xf32>
    %68 = math.exp %67 : vector<1x32xf32>
    %cst_36 = arith.constant 1.000000e+00 : f32
    %69 = vector.broadcast %cst_36 : f32 to vector<1x32xf32>
    %70 = arith.addf %69, %68 : vector<1x32xf32>
    %71 = arith.divf %69, %70 : vector<1x32xf32>
    %c0_37 = arith.constant 0 : index
    %c0_38 = arith.constant 0 : index
    %72 = vector.load %arg13[%c0_37, %c0_38] : memref<1x32xf32, #tpu.memory_space<vmem>>, vector<1x32xf32>
    tpu.vector_store %arg13[%c0_37, %c0_38], %71 {strides = array<i32>} : memref<1x32xf32, #tpu.memory_space<vmem>>, vector<1x32xf32>,
    return
  }
  func.func @transform_0(%arg0: i32) -> (i32, i32) {
    %c0_i32 = arith.constant 0 : i32
    %c0_i32_0 = arith.constant 0 : i32
    %c0_i32_1 = arith.constant 0 : i32
    return %c0_i32, %c0_i32_0 : i32, i32
  }
  func.func @transform_1(%arg0: i32) -> (i32, i32) {
    %c0_i32 = arith.constant 0 : i32
    %c0_i32_0 = arith.constant 0 : i32
    return %arg0, %c0_i32 : i32, i32
  }
  func.func @transform_2(%arg0: i32) -> (i32, i32) {
    %c0_i32 = arith.constant 0 : i32
    %c0_i32_0 = arith.constant 0 : i32
    %c0_i32_1 = arith.constant 0 : i32
    return %c0_i32, %c0_i32_0 : i32, i32
  }
  func.func @transform_3(%arg0: i32) -> (i32, i32) {
    %c0_i32 = arith.constant 0 : i32
    %c0_i32_0 = arith.constant 0 : i32
    %c0_i32_1 = arith.constant 0 : i32
    return %c0_i32, %c0_i32_0 : i32, i32
  }
  func.func @transform_4(%arg0: i32) -> (i32, i32) {
    %c0_i32 = arith.constant 0 : i32
    %c0_i32_0 = arith.constant 0 : i32
    %c0_i32_1 = arith.constant 0 : i32
    return %c0_i32, %c0_i32_0 : i32, i32
  }
  func.func @transform_5(%arg0: i32) -> (i32, i32) {
    %c0_i32 = arith.constant 0 : i32
    %c0_i32_0 = arith.constant 0 : i32
    %c0_i32_1 = arith.constant 0 : i32
    return %c0_i32, %c0_i32_0 : i32, i32
  }
  func.func @transform_6(%arg0: i32) -> (i32, i32) {
    %c0_i32 = arith.constant 0 : i32
    %c0_i32_0 = arith.constant 0 : i32
    %c0_i32_1 = arith.constant 0 : i32
    return %c0_i32, %c0_i32_0 : i32, i32
  }
  func.func @transform_7(%arg0: i32) -> (i32, i32) {
    %c0_i32 = arith.constant 0 : i32
    %c0_i32_0 = arith.constant 0 : i32
    %c0_i32_1 = arith.constant 0 : i32
    return %c0_i32, %c0_i32_0 : i32, i32
  }
  func.func @transform_8(%arg0: i32) -> (i32, i32) {
    %c0_i32 = arith.constant 0 : i32
    %c0_i32_0 = arith.constant 0 : i32
    %c0_i32_1 = arith.constant 0 : i32
    return %c0_i32, %c0_i32_0 : i32, i32
  }
  func.func @transform_9(%arg0: i32) -> (i32, i32) {
    %c0_i32 = arith.constant 0 : i32
    %c0_i32_0 = arith.constant 0 : i32
    %c0_i32_1 = arith.constant 0 : i32
    return %c0_i32, %c0_i32_0 : i32, i32
  }
  func.func @transform_10(%arg0: i32) -> (i32, i32) {
    %c0_i32 = arith.constant 0 : i32
    %c0_i32_0 = arith.constant 0 : i32
    %c0_i32_1 = arith.constant 0 : i32
    return %c0_i32, %c0_i32_0 : i32, i32
  }
  func.func @transform_11(%arg0: i32) -> (i32, i32) {
    %c0_i32 = arith.constant 0 : i32
    %c0_i32_0 = arith.constant 0 : i32
    %c0_i32_1 = arith.constant 0 : i32
    return %c0_i32, %c0_i32_0 : i32, i32
  }
  func.func @transform_12(%arg0: i32) -> (i32, i32) {
    %c0_i32 = arith.constant 0 : i32
    %c0_i32_0 = arith.constant 0 : i32
    return %arg0, %c0_i32 : i32, i32
  }
}

</mosaic_0001>

<bundles_post_ra>
// kernel: rapn_score.1
= control target key start
LH: loop header
LB: loop body
LE: loop exit
PB: predicated region body
PF: predicated region fallthrough
CT: control target
= control target key end

     0   :  { %vm156_vm0 = vcmask 523264   ;;  %vm766_vm1 = vcmask 261120   ;;  %vm794_vm2 = vcmask 31744   ;;  %vm866_vm9 = vcmask 258052   ;;  %s1550_s2 = inlined_call_operand.vmem [shape: bf16[64,512], index: 2, kind: input, shape index: {}]   ;;  %s1551_s1 = inlined_call_operand.vmem [shape: f32[32,64], index: 1, kind: input, shape index: {}]   ;;  %s1552_s4 = inlined_call_operand.vmem [shape: bf16[512,128], index: 4, kind: input, shape index: {}]   ;;  %s1553_s5 = inlined_call_operand.vmem [shape: f32[1,128], index: 5, kind: input, shape index: {}]   ;;  %s1554_s3 = inlined_call_operand.vmem [shape: f32[1,512], index: 3, kind: input, shape index: {}]   ;;  %s1555_s6 = inlined_call_operand.vmem [shape: bf16[128,64], index: 6, kind: input, shape index: {}]   ;;  %s1556_s7 = inlined_call_operand.vmem [shape: f32[1,64], index: 7, kind: input, shape index: {}]   ;;  %s1557_s9 = inlined_call_operand.vmem [shape: f32[1,32], index: 9, kind: input, shape index: {}]   ;;  %s1558_s8 = inlined_call_operand.vmem [shape: bf16[64,32], index: 8, kind: input, shape index: {}]   ;;  %s1559_s10 = inlined_call_operand.vmem [shape: bf16[5,32], index: 10, kind: input, shape index: {}]   ;;  %s1560_s11 = inlined_call_operand.<no memory space> [shape: f32[1,1], index: 11, kind: input, shape index: {}]   ;;  %s1561_s0 = inlined_call_operand.vmem [shape: s32[1,32], index: 0, kind: input, shape index: {}]   ;;  %s1562_s12 = inlined_call_operand.vmem [shape: f32[1,32], index: 12, kind: output, shape index: {}]  }
   0x1   :  { %v922_v0 = vld [vmem:[%s1550_s2 + $0x60] sm:$0xf]  ;;  %v1138_v1 = vld [vmem:[%s1550_s2 + $0x6c] sm:$0xf0]  ;;  %v1136_v2 = vld [vmem:[%s1550_s2 + $0x64] sm:$0xf] }
   0x2   :  { %v923_v3 = vor.u32 %v1138_v1, %v922_v0  ;;  %v924_v4 = vld [vmem:[%s1550_s2 + $0x70] sm:$0xf0]  ;;  %v930_v5 = vld [vmem:[%s1550_s2 + $0x68] sm:$0xf]  ;;  %v1139_v6 = vld [vmem:[%s1550_s2 + $0x74] sm:$0xf0] }
   0x3   :  { %v927_v7 = vor.u32 %v1136_v2, %v924_v4  ;;  %v931_v8 = vor.u32 %v1139_v6, %v930_v5  ;;  %v1137_v9 = vld [vmem:[%s1550_s2 + $0x6c] sm:$0xf]  ;;  %v932_v10 = vld [vmem:[%s1550_s2 + $0x78] sm:$0xf0]  ;;  %v906_v11 = vld [vmem:[%s1550_s2 + $0x40] sm:$0xf] }
   0x4   :  { %167 = vmatpush.bf16.msra.mxu0 %v923_v3  ;;  %v935_v12 = vor.u32 %v1137_v9, %v932_v10  ;;  %v1134_v13 = vld [vmem:[%s1550_s2 + $0x4c] sm:$0xf0]  ;;  %v1132_v14 = vld [vmem:[%s1550_s2 + $0x44] sm:$0xf]  ;;  %v908_v15 = vld [vmem:[%s1550_s2 + $0x50] sm:$0xf0] }
   0x5   :  { %186 = vmatpush.bf16.msra.mxu1 %v927_v7  ;;  %205 = vmatpush.bf16.msra.mxu2 %v931_v8  ;;  %v907_v16 = vor.u32 %v1134_v13, %v906_v11  ;;  %v911_v17 = vor.u32 %v1132_v14, %v908_v15  ;;  %v914_v18 = vld [vmem:[%s1550_s2 + $0x48] sm:$0xf]  ;;  %v1135_v19 = vld [vmem:[%s1550_s2 + $0x54] sm:$0xf0]  ;;  %v1133_v20 = vld [vmem:[%s1550_s2 + $0x4c] sm:$0xf] }
   0x6   :  { %224 = vmatpush.bf16.msra.mxu3 %v935_v12  ;;  %v915_v21 = vor.u32 %v1135_v19, %v914_v18  ;;  %v916_v22 = vld [vmem:[%s1550_s2 + $0x58] sm:$0xf0]  ;;  %v890_v23 = vld [vmem:[%s1550_s2 + $0x20] sm:$0xf]  ;;  %v1130_v24 = vld [vmem:[%s1550_s2 + $0x2c] sm:$0xf0] }
   0x7   :  { %v919_v25 = vor.u32 %v1133_v20, %v916_v22  ;;  %v1128_v26 = vld [vmem:[%s1550_s2 + $0x24] sm:$0xf]  ;;  %v892_v27 = vld [vmem:[%s1550_s2 + $0x30] sm:$0xf0]  ;;  %v898_v28 = vld [vmem:[%s1550_s2 + $0x28] sm:$0xf]  ;;  %v891_v29 = vor.u32 %v1130_v24, %v890_v23 }
   0x8   :  { %168 = vmatpush.bf16.msra.mxu0 %v907_v16  ;;  %v1131_v30 = vld [vmem:[%s1550_s2 + $0x34] sm:$0xf0]  ;;  %v1129_v31 = vld [vmem:[%s1550_s2 + $0x2c] sm:$0xf]  ;;  %v900_v32 = vld [vmem:[%s1550_s2 + $0x38] sm:$0xf0]  ;;  %v895_v33 = vor.u32 %v1128_v26, %v892_v27 }
   0x9   :  { %187 = vmatpush.bf16.msra.mxu1 %v911_v17  ;;  %206 = vmatpush.bf16.msra.mxu2 %v915_v21  ;;  %v899_v34 = vor.u32 %v1131_v30, %v898_v28  ;;  %v874_v35 = vld [vmem:[%s1550_s2] sm:$0xf]  ;;  %v1126_v36 = vld [vmem:[%s1550_s2 + $0xc] sm:$0xf0]  ;;  %v1124_v37 = vld [vmem:[%s1550_s2 + $0x4] sm:$0xf]  ;;  %v903_v38 = vor.u32 %v1129_v31, %v900_v32 }
   0xa   :  { %225 = vmatpush.bf16.msra.mxu3 %v919_v25  ;;  %v876_v39 = vld [vmem:[%s1550_s2 + $0x10] sm:$0xf0]  ;;  %v882_v40 = vld [vmem:[%s1550_s2 + $0x8] sm:$0xf]  ;;  %v1127_v41 = vld [vmem:[%s1550_s2 + $0x14] sm:$0xf0]  ;;  %v875_v44 = vor.u32 %v1126_v36, %v874_v35 }
   0xb   :  { %v1125_v42 = vld [vmem:[%s1550_s2 + $0xc] sm:$0xf]  ;;  %v884_v43 = vld [vmem:[%s1550_s2 + $0x18] sm:$0xf0]  ;;  %v44_v45 = vld [vmem:[%s1551_s1] sm:$0xff]  ;;  %v879_v47 = vor.u32 %v1124_v37, %v876_v39  ;;  %v883_v48 = vor.u32 %v1127_v41, %v882_v40 }
   0xc   :  { %169 = vmatpush.bf16.msra.mxu0 %v891_v29  ;;  %v45_v46 = vld [vmem:[%s1551_s1 + $0x8] sm:$0xff]  ;;  %v887_v49 = vor.u32 %v1125_v42, %v884_v43  ;;  %v1147_v50 = vld [vmem:[%s1552_s4 + $0x38] sm:$0xff]  ;;  %v1146_v54 = vld [vmem:[%s1552_s4 + $0x30] sm:$0xff] }
   0xd   :  { %188 = vmatpush.bf16.msra.mxu1 %v895_v33  ;;  %207 = vmatpush.bf16.msra.mxu2 %v899_v34  ;;  %v48_v51 = vpack.c.bf16 %v45_v46, %v44_v45  ;;  %v1155_v52 = vld [vmem:[%s1552_s4 + $0x78] sm:$0xff]  ;;  %v1154_v56 = vld [vmem:[%s1552_s4 + $0x70] sm:$0xff]  ;;  %v1145_v58 = vld [vmem:[%s1552_s4 + $0x28] sm:$0xff] }
   0xe   :  { %226 = vmatpush.bf16.msra.mxu3 %v903_v38  ;;  %v1163_v53 = vld [vmem:[%s1552_s4 + $0xb8] sm:$0xff]  ;;  %v1162_v57 = vld [vmem:[%s1552_s4 + $0xb0] sm:$0xff]  ;;  %v1153_v60 = vld [vmem:[%s1552_s4 + $0x68] sm:$0xff] }
   0xf   :  { %v1171_v55 = vld [vmem:[%s1552_s4 + $0xf8] sm:$0xff]  ;;  %v1170_v59 = vld [vmem:[%s1552_s4 + $0xf0] sm:$0xff]  ;;  %v1161_v61 = vld [vmem:[%s1552_s4 + $0xa8] sm:$0xff] }
  0x10   :  { %170 = vmatpush.bf16.msra.mxu0 %v875_v44  ;;  %v1144_v62 = vld [vmem:[%s1552_s4 + $0x20] sm:$0xff]  ;;  %v1169_v63 = vld [vmem:[%s1552_s4 + $0xe8] sm:$0xff]  ;;  %v46_v1 = vld [vmem:[%s1551_s1 + $0x10] sm:$0xff] }
  0x11   :  { %189 = vmatpush.bf16.msra.mxu1 %v879_v47  ;;  %208 = vmatpush.bf16.msra.mxu2 %v883_v48  ;;  %v1152_v0 = vld [vmem:[%s1552_s4 + $0x60] sm:$0xff]  ;;  %v47_v2 = vld [vmem:[%s1551_s1 + $0x18] sm:$0xff]  ;;  %v1142_v8 = vld [vmem:[%s1552_s4 + $0x10] sm:$0xff]  ;;  %s1209_s1 = smov 126  }
  0x12   :  { %227 = vmatpush.bf16.msra.mxu3 %v887_v49  ;;  %v49_v3 = vpack.c.bf16 %v47_v2, %v46_v1  ;;  %v1143_v4 = vld [vmem:[%s1552_s4 + $0x18] sm:$0xff]  ;;  %v1160_v6 = vld [vmem:[%s1552_s4 + $0xa0] sm:$0xff]  ;;  %v1150_v9 = vld [vmem:[%s1552_s4 + $0x50] sm:$0xff] }
  0x13   :  { %936 = vmatmul.msk.bf16.vlgmr.msra.gmra.mxu0 %vm156_vm0, %v48_v51  ;;  %v1151_v5 = vld [vmem:[%s1552_s4 + $0x58] sm:$0xff]  ;;  %v1168_v7 = vld [vmem:[%s1552_s4 + $0xe0] sm:$0xff]  ;;  %v1141_v12 = vld [vmem:[%s1552_s4 + $0x8] sm:$0xff] }
  0x14   :  { %523 = vmatpush.bf16.msrb.mxu0 %v1147_v50  ;;  %938 = vmatmul.msk.bf16.vlgmr.msra.gmra.mxu1 %vm156_vm0, %v48_v51  ;;  %v1159_v10 = vld [vmem:[%s1552_s4 + $0x98] sm:$0xff]  ;;  %v1149_v13 = vld [vmem:[%s1552_s4 + $0x48] sm:$0xff]  ;;  %v1158_v14 = vld [vmem:[%s1552_s4 + $0x90] sm:$0xff] }
  0x15   :  { %542 = vmatpush.bf16.msrb.mxu1 %v1155_v52  ;;  %940 = vmatmul.msk.bf16.vlgmr.msra.gmra.mxu2 %vm156_vm0, %v48_v51  ;;  %v1167_v11 = vld [vmem:[%s1552_s4 + $0xd8] sm:$0xff]  ;;  %v1166_v15 = vld [vmem:[%s1552_s4 + $0xd0] sm:$0xff]  ;;  %v1140_v16 = vld [vmem:[%s1552_s4] sm:$0xff] }
  0x16   :  { %942 = vmatmul.msk.bf16.vlgmr.msra.gmra.mxu3 %vm156_vm0, %v48_v51  ;;  %561 = vmatpush.bf16.msrb.mxu2 %v1163_v53  ;;  %v1148_v17 = vld [vmem:[%s1552_s4 + $0x40] sm:$0xff]  ;;  %v1157_v18 = vld [vmem:[%s1552_s4 + $0x88] sm:$0xff]  ;;  %v1179_v30 = vld [vmem:[%s1555_s6 + $0x38] sm:$0xff] }
  0x17   :  { %580 = vmatpush.bf16.msrb.mxu3 %v1171_v55  ;;  %v1165_v19 = vld [vmem:[%s1552_s4 + $0xc8] sm:$0xff]  ;;  %v1156_v20 = vld [vmem:[%s1552_s4 + $0x80] sm:$0xff] }
  0x18   :  { %524 = vmatpush.bf16.msrb.mxu0 %v1146_v54  ;;  %v1164_v21 = vld [vmem:[%s1552_s4 + $0xc0] sm:$0xff] }
  0x19   :  { %543 = vmatpush.bf16.msrb.mxu1 %v1154_v56  ;;  %v66_v22 = vld [vmem:[%s1554_s3] sm:$0xf] }
  0x1a   :  { %562 = vmatpush.bf16.msrb.mxu2 %v1162_v57  ;;  %v68_v24 = vperm.slane %v66_v22, 0  ;;  %v69_v26 = vperm.slane %v66_v22, 1  ;;  %v70_v37 = vperm.slane %v66_v22, 2  ;;  %v71_v39 = vperm.slane %v66_v22, 3  ;;  %v1176_v22 = vld [vmem:[%s1555_s6 + $0x20] sm:$0xff] }
  0x1b   :  { %581 = vmatpush.bf16.msrb.mxu3 %v1170_v59 }
  0x1c   :  { %525 = vmatpush.bf16.msrb.mxu0 %v1145_v58 }
  0x1d   :  { %544 = vmatpush.bf16.msrb.mxu1 %v1153_v60 }
  0x1e   :  { %563 = vmatpush.bf16.msrb.mxu2 %v1161_v61 }
  0x1f   :  { %582 = vmatpush.bf16.msrb.mxu3 %v1169_v63 }
  0x20   :  { %526 = vmatpush.bf16.msrb.mxu0 %v1144_v62 }
  0x21   :  { %545 = vmatpush.bf16.msrb.mxu1 %v1152_v0 }
  0x22   :  { %564 = vmatpush.bf16.msrb.mxu2 %v1160_v6 }
  0x23   :  { %937 = vmatmul.msk.bf16.gmra.mxu0 %vm156_vm0, %v49_v3  ;;  %583 = vmatpush.bf16.msrb.mxu3 %v1168_v7 }
  0x24   :  { %939 = vmatmul.msk.bf16.gmra.mxu1 %vm156_vm0, %v49_v3  ;;  %527 = vmatpush.bf16.msrb.mxu0 %v1143_v4 }
  0x25   :  { %941 = vmatmul.msk.bf16.gmra.mxu2 %vm156_vm0, %v49_v3  ;;  %546 = vmatpush.bf16.msrb.mxu1 %v1151_v5 }
  0x26   :  { %943 = vmatmul.msk.bf16.gmra.mxu3 %vm156_vm0, %v49_v3  ;;  %565 = vmatpush.bf16.msrb.mxu2 %v1159_v10 }
  0x27   :  { %584 = vmatpush.bf16.msrb.mxu3 %v1167_v11 }
  0x28   :  { %528 = vmatpush.bf16.msrb.mxu0 %v1142_v8 }
  0x29   :  { %547 = vmatpush.bf16.msrb.mxu1 %v1150_v9 }
  0x2a   :  { %566 = vmatpush.bf16.msrb.mxu2 %v1158_v14 }
  0x2b   :  { %585 = vmatpush.bf16.msrb.mxu3 %v1166_v15 }
  0x2c   :  { %529 = vmatpush.bf16.msrb.mxu0 %v1141_v12 }
  0x2d   :  { %548 = vmatpush.bf16.msrb.mxu1 %v1149_v13 }
  0x2e   :  { %567 = vmatpush.bf16.msrb.mxu2 %v1157_v18 }
  0x2f   :  { %586 = vmatpush.bf16.msrb.mxu3 %v1165_v19 }
  0x30   :  { %530 = vmatpush.bf16.msrb.mxu0 %v1140_v16 }
  0x31   :  { %549 = vmatpush.bf16.msrb.mxu1 %v1148_v17 }
  0x32   :  { %568 = vmatpush.bf16.msrb.mxu2 %v1156_v20  ;;  %v1178_v20 = vld [vmem:[%s1555_s6 + $0x30] sm:$0xff] }
  0x33   :  { %587 = vmatpush.bf16.msrb.mxu3 %v1164_v21  ;;  %v1177_v21 = vld [vmem:[%s1555_s6 + $0x28] sm:$0xff] }
  0x34   :  { %673 = vmatpush.bf16.msra.mxu0 %v1179_v30 }
  0x37   :  { %1184 = vmatpush.bf16.msra.mxu3 %v1179_v30 }
  0x38   :  { %674 = vmatpush.bf16.msra.mxu0 %v1178_v20 }
  0x3b   :  { %1185 = vmatpush.bf16.msra.mxu3 %v1178_v20 }
  0x3c   :  { %675 = vmatpush.bf16.msra.mxu0 %v1177_v21 }
  0x3f   :  { %1186 = vmatpush.bf16.msra.mxu3 %v1177_v21 }
  0x40   :  { %676 = vmatpush.bf16.msra.mxu0 %v1176_v22 }
  0x43   :  { %1187 = vmatpush.bf16.msra.mxu3 %v1176_v22 }
  0x90   :  { %v172_v23 = vpop.f32.mrf.mxu0 }
  0x91   :  { %v191_v25 = vpop.f32.mrf.mxu1  ;;  %v173_v27 = vadd.f32 %v172_v23, %v68_v24  ;;  %v1175_v23 = vld [vmem:[%s1555_s6 + $0x18] sm:$0xff] }
  0x92   :  { %v192_v28 = vadd.f32 %v191_v25, %v69_v26  ;;  %677 = vmatpush.bf16.msra.mxu0 %v1175_v23  ;;  %1188 = vmatpush.bf16.msra.mxu3 %v1175_v23  ;;  %v1173_v25 = vld [vmem:[%s1555_s6 + $0x8] sm:$0xff] }
  0x93   :  { %v239_v33 = vmax.f32 %v173_v27, 0.0 }
  0x94   :  { %v240_v36 = vmax.f32 %v192_v28, 0.0 }
  0x98   :  { %v210_v29 = vpop.f32.mrf.mxu2  ;;  %v174_v32 = vpop.f32.mrf.mxu0 }
  0x99   :  { %v229_v31 = vpop.f32.mrf.mxu3  ;;  %v175_v34 = vadd.f32 %v174_v32, %v68_v24  ;;  %v193_v35 = vpop.f32.mrf.mxu1  ;;  %v211_v43 = vadd.f32 %v210_v29, %v70_v37  ;;  %v1199_v29 = vld [vmem:[%s1553_s5] ss:$0 sm:$0xff] }
  0x9a   :  { %v194_v38 = vadd.f32 %v193_v35, %v69_v26  ;;  %v230_v45 = vadd.f32 %v229_v31, %v71_v39 }
  0x9b   :  { %v243_v40 = vmax.f32 %v175_v34, 0.0  ;;  %v241_v52 = vmax.f32 %v211_v43, 0.0 }
  0x9c   :  { %v244_v41 = vmax.f32 %v194_v38, 0.0  ;;  %v242_v54 = vmax.f32 %v230_v45, 0.0 }
  0x9d   :  { %v255_v42 = vpack.c.bf16 %v243_v40, %v239_v33 }
  0x9e   :  { %v256_v44 = vpack.c.bf16 %v244_v41, %v240_v36 }
  0x9f   :  { %531 = vmatmul.bf16.vlgmr.msrb.gmra.mxu0 %v255_v42 }
  0xa0   :  { %v212_v46 = vpop.f32.mrf.mxu2  ;;  %550 = vmatmul.bf16.vlgmr.msrb.gmra.mxu1 %v256_v44  ;;  %v177_v49 = vpop.f32.mrf.mxu0 }
  0xa1   :  { %v213_v47 = vadd.f32 %v212_v46, %v70_v37  ;;  %v231_v48 = vpop.f32.mrf.mxu3  ;;  %v196_v51 = vpop.f32.mrf.mxu1  ;;  %v178_v58 = vadd.f32 %v177_v49, %v68_v24 }
  0xa2   :  { %v232_v50 = vadd.f32 %v231_v48, %v71_v39  ;;  %v197_v59 = vadd.f32 %v196_v51, %v69_v26 }
  0xa3   :  { %v245_v53 = vmax.f32 %v213_v47, 0.0  ;;  %v247_v63 = vmax.f32 %v178_v58, 0.0 }
  0xa4   :  { %v246_v55 = vmax.f32 %v232_v50, 0.0  ;;  %v248_v2 = vmax.f32 %v197_v59, 0.0 }
  0xa5   :  { %v257_v56 = vpack.c.bf16 %v245_v53, %v241_v52 }
  0xa6   :  { %v258_v57 = vpack.c.bf16 %v246_v55, %v242_v54 }
  0xa7   :  { %569 = vmatmul.bf16.vlgmr.msrb.gmra.mxu2 %v257_v56 }
  0xa8   :  { %588 = vmatmul.bf16.vlgmr.msrb.gmra.mxu3 %v258_v57  ;;  %v215_v60 = vpop.f32.mrf.mxu2  ;;  %v179_v62 = vpop.f32.mrf.mxu0 }
  0xa9   :  { %v234_v61 = vpop.f32.mrf.mxu3  ;;  %v180_v0 = vadd.f32 %v179_v62, %v68_v24  ;;  %v198_v1 = vpop.f32.mrf.mxu1  ;;  %v216_v7 = vadd.f32 %v215_v60, %v70_v37  ;;  %v1174_v24 = vld [vmem:[%s1555_s6 + $0x10] sm:$0xff] }
  0xaa   :  { %v199_v3 = vadd.f32 %v198_v1, %v69_v26  ;;  %v235_v9 = vadd.f32 %v234_v61, %v71_v39  ;;  %678 = vmatpush.bf16.msra.mxu0 %v1174_v24  ;;  %1189 = vmatpush.bf16.msra.mxu3 %v1174_v24  ;;  %v1172_v26 = vld [vmem:[%s1555_s6] sm:$0xff] }
  0xab   :  { %v251_v4 = vmax.f32 %v180_v0, 0.0  ;;  %v249_v14 = vmax.f32 %v216_v7, 0.0  ;;  %v1200_v7 = vld [vmem:[%s1556_s7] ss:$0 sm:$0xff] }
  0xac   :  { %v252_v5 = vmax.f32 %v199_v3, 0.0  ;;  %v250_v16 = vmax.f32 %v235_v9, 0.0  ;;  %v1182_v3 = vld [vmem:[%s1558_s8 + $0x10] sm:$0xff]  ;;  %v1201_v24 = vld [vmem:[%s1557_s9] ss:$0 sm:$0xff]  ;;  %s1206_s9 = smov 4  }
  0xad   :  { %v259_v6 = vpack.c.bf16 %v251_v4, %v247_v63  ;;  %v1181_v4 = vld [vmem:[%s1558_s8 + $0x8] sm:$0xff] }
  0xae   :  { %v260_v8 = vpack.c.bf16 %v252_v5, %v248_v2  ;;  %679 = vmatpush.bf16.msra.mxu0 %v1173_v25  ;;  %1190 = vmatpush.bf16.msra.mxu3 %v1173_v25  ;;  %v1183_v2 = vld [vmem:[%s1558_s8 + $0x18] sm:$0xff]  ;;  %v1180_v5 = vld [vmem:[%s1558_s8] sm:$0xff] }
  0xaf   :  { %536 = vmatmul.bf16.gmra.mxu0 %v259_v6  ;;  %744 = vmatpush.bf16.msra.mxu1 %v1183_v2 }
  0xb0   :  { %v217_v10 = vpop.f32.mrf.mxu2  ;;  %555 = vmatmul.bf16.gmra.mxu1 %v260_v8 }
  0xb1   :  { %v218_v11 = vadd.f32 %v217_v10, %v70_v37  ;;  %v236_v12 = vpop.f32.mrf.mxu3 }
  0xb2   :  { %v237_v13 = vadd.f32 %v236_v12, %v71_v39  ;;  %680 = vmatpush.bf16.msra.mxu0 %v1172_v26  ;;  %1191 = vmatpush.bf16.msra.mxu3 %v1172_v26 }
  0xb3   :  { %v253_v15 = vmax.f32 %v218_v11, 0.0  ;;  %745 = vmatpush.bf16.msra.mxu1 %v1182_v3 }
  0xb4   :  { %v254_v17 = vmax.f32 %v237_v13, 0.0 }
  0xb5   :  { %v261_v18 = vpack.c.bf16 %v253_v15, %v249_v14 }
  0xb6   :  { %v262_v19 = vpack.c.bf16 %v254_v17, %v250_v16 }
  0xb7   :  { %574 = vmatmul.bf16.gmra.mxu2 %v261_v18  ;;  %746 = vmatpush.bf16.msra.mxu1 %v1181_v4 }
  0xb8   :  { %593 = vmatmul.bf16.gmra.mxu3 %v262_v19 }
  0xbb   :  { %747 = vmatpush.bf16.msra.mxu1 %v1180_v5 }
 0x11c   :  { %v532_v27 = vpop.f32.mrf.mxu0 }
 0x11d   :  { %v551_v28 = vpop.f32.mrf.mxu1  ;;  %v533_v31 = vadd.f32 %v1199_v29, %v532_v27 }
 0x11f   :  { %v552_v35 = vadd.f32 %v551_v28, %v533_v31 }
 0x124   :  { %v534_v30 = vpop.f32.mrf.mxu0 }
 0x125   :  { %v553_v34 = vpop.f32.mrf.mxu1  ;;  %v535_v36 = vadd.f32 %v1199_v29, %v534_v30 }
 0x127   :  { %v554_v39 = vadd.f32 %v553_v34, %v535_v36 }
 0x12a   :  { %v570_v32 = vpop.f32.mrf.mxu2 }
 0x12b   :  { %v589_v33 = vpop.f32.mrf.mxu3  ;;  %v571_v37 = vadd.f32 %v570_v32, %v552_v35 }
 0x12c   :  { %v537_v38 = vpop.f32.mrf.mxu0 }
 0x12d   :  { %v590_v41 = vadd.f32 %v589_v33, %v571_v37  ;;  %v556_v45 = vpop.f32.mrf.mxu1  ;;  %v538_v48 = vadd.f32 %v1199_v29, %v537_v38  ;;  %v765_v38 = vld [vmem:[%s1559_s10] sm:$0x7]  ;;  %s1208_s10 = smov 127  }
 0x12f   :  { %v599_v46 = vmax.f32 %v590_v41, 0.0  ;;  %v557_v53 = vadd.f32 %v556_v45, %v538_v48  ;;  %v17_v41 = vstv %s1560_s11  ;;  %s1210_s11 = smov 125  }
 0x130   :  { %18 = vst [vmem:[#allocation2] sm:$0x1] %v17_v41 }
 0x132   :  { %v572_v40 = vpop.f32.mrf.mxu2 }
 0x133   :  { %v573_v42 = vadd.f32 %v572_v40, %v554_v39  ;;  %v591_v43 = vpop.f32.mrf.mxu3 }
 0x134   :  { %v539_v50 = vpop.f32.mrf.mxu0 }
 0x135   :  { %v592_v44 = vadd.f32 %v591_v43, %v573_v42  ;;  %v540_v54 = vadd.f32 %v1199_v29, %v539_v50  ;;  %v558_v56 = vpop.f32.mrf.mxu1  ;;  %v1207_v42 = vmov 0  }
 0x136   :  { %1197 = vset.pattern.permute.xlu2 %v1207_v42  ;;  %1198 = vset.pattern.permute.xlu0 %v1207_v42 }
 0x137   :  { %v600_v47 = vmax.f32 %v592_v44, 0.0  ;;  %v559_v57 = vadd.f32 %v558_v56, %v540_v54  ;;  %v839_v45 = vld [vmem:[#allocation2] sm:$0x1] }
 0x138   :  { %842 = vperm.xlu2 %1197, %v839_v45  }
 0x139   :  { %v603_v49 = vpack.c.bf16 %v600_v47, %v599_v46 }
 0x13a   :  { %v575_v51 = vpop.f32.mrf.mxu2 }
 0x13b   :  { %v594_v52 = vpop.f32.mrf.mxu3  ;;  %681 = vmatmul.bf16.vlgmr.msra.gmra.mxu0 %v603_v49  ;;  %v576_v55 = vadd.f32 %v575_v51, %v557_v53  ;;  %v789_v49 = vld [vmem:[%s1561_s0] sm:$0x1] }
 0x13c   :  { %vm796_vm3 = vcmp.ge.s32.totalorder %v789_v49, 4  ;;  %vm802_vm4 = vcmp.ge.s32.totalorder %v789_v49, 3  ;;  %vm815_vm5 = vcmp.ge.s32.totalorder %v789_v49, 2  ;;  %vm827_vm6 = vcmp.ge.s32.totalorder %v789_v49, 1 }
 0x13d   :  { %v595_v59 = vadd.f32 %v594_v52, %v576_v55 }
 0x13f   :  { %v601_v63 = vmax.f32 %v595_v59, 0.0 }
 0x142   :  { %v577_v58 = vpop.f32.mrf.mxu2 }
 0x143   :  { %v578_v60 = vadd.f32 %v577_v58, %v559_v57  ;;  %v596_v61 = vpop.f32.mrf.mxu3 }
 0x145   :  { %v597_v62 = vadd.f32 %v596_v61, %v578_v60 }
 0x147   :  { %v602_v0 = vmax.f32 %v597_v62, 0.0 }
 0x149   :  { %v604_v1 = vpack.c.bf16 %v602_v0, %v601_v63 }
 0x14b   :  { %686 = vmatmul.bf16.vlgmr.msra.gmra.mxu3 %v604_v1 }
 0x192   :  { %v843_v59 = vpop.permute.xlu2 %842 }
 0x193   :  { %v845_v1 = vperm.slane %v843_v59, 0 }
 0x1b8   :  { %v682_v6 = vpop.f32.mrf.mxu0 }
 0x1b9   :  { %v683_v8 = vadd.f32 %v1200_v7, %v682_v6 }
 0x1bb   :  { %v692_v11 = vmax.f32 %v683_v8, 0.0 }
 0x1c0   :  { %v684_v9 = vpop.f32.mrf.mxu0 }
 0x1c1   :  { %v685_v10 = vadd.f32 %v1200_v7, %v684_v9 }
 0x1c3   :  { %v693_v12 = vmax.f32 %v685_v10, 0.0 }
 0x1c5   :  { %v696_v13 = vpack.c.bf16 %v693_v12, %v692_v11 }
 0x1c7   :  { %1120 = vmatmul.msk.bf16.vlgmr.msra.gmra.mxu1 %vm156_vm0, %v696_v13 }
 0x1ce   :  { %v687_v14 = vpop.f32.mrf.mxu3 }
 0x1cf   :  { %v688_v15 = vadd.f32 %v1200_v7, %v687_v14 }
 0x1d1   :  { %v694_v18 = vmax.f32 %v688_v15, 0.0 }
 0x1d6   :  { %v689_v16 = vpop.f32.mrf.mxu3 }
 0x1d7   :  { %v690_v17 = vadd.f32 %v1200_v7, %v689_v16 }
 0x1d9   :  { %v695_v19 = vmax.f32 %v690_v17, 0.0 }
 0x1db   :  { %v697_v20 = vpack.c.bf16 %v695_v19, %v694_v18 }
 0x1dd   :  { %1121 = vmatmul.msk.bf16.gmra.mxu1 %vm156_vm0, %v697_v20 }
 0x244   :  { %v749_v21 = vpop.f32.mrf.mxu1 }
 0x245   :  { %v750_v31 = vadd.f32 %v1201_v24, %v749_v21 }
 0x247   :  { %v759_v35 = vmax.f32 %v750_v31, 0.0 }
 0x24c   :  { %v751_v22 = vpop.f32.mrf.mxu1 }
 0x24d   :  { %v752_v28 = vadd.f32 %v1201_v24, %v751_v22 }
 0x24f   :  { %v760_v33 = vmax.f32 %v752_v28, 0.0 }
 0x251   :  { %v763_v36 = vpack.c.bf16 %v760_v33, %v759_v35 }
 0x253   :  { %v771_v37 = vsel %vm766_vm1, %v763_v36, 0 }
 0x25a   :  { %v754_v23 = vpop.f32.mrf.mxu1 }
 0x25b   :  { %v755_v25 = vadd.f32 %v1201_v24, %v754_v23 }
 0x25d   :  { %v761_v29 = vmax.f32 %v755_v25, 0.0 }
 0x262   :  { %v756_v26 = vpop.f32.mrf.mxu1 }
 0x263   :  { %v757_v27 = vadd.f32 %v1201_v24, %v756_v26 }
 0x265   :  { %v762_v30 = vmax.f32 %v757_v27, 0.0 }
 0x267   :  { %v764_v32 = vpack.c.bf16 %v762_v30, %v761_v29 }
 0x269   :  { %v774_v34 = vsel %vm766_vm1, %v764_v32, 0 }
 0x26a   :  { %782 = vmatpush.bf16.xpose.msra.mxu2 %v774_v34 }
 0x272   :  { %783 = vmatpush.bf16.xpose.msra.mxu2 %v771_v37 }
 0x279   :  { %1122 = vmatmul.msk.bf16.vlgmr.msra.gmra.mxu2 %vm766_vm1, %v765_v38 }
 0x2fc   :  { %v785_v39 = vpop.f32.mrf.mxu2 }
 0x2fd   :  { %791 = vrot.lane.b32.xlu0 %v785_v39, %s1206_s9 }
 0x304   :  { %v787_v40 = vpop.f32.mrf.mxu2 }
 0x36f   :  { %v792_v43 = vpop.permute.xlu0 %791 }
 0x370   :  { %v795_v44 = vsel %vm794_vm2, 0.0, %v792_v43 }
 0x371   :  { %804 = vst [vmem:[#allocation1] sm:$0xff] %v795_v44  ;;  %v797_v51 = vsel %vm796_vm3, %v795_v44, 0.0 }
 0x372   :  { %v799_v54 = vperm.slane %v797_v51, 0 }
 0x374   :  { %v801_v57 = vadd.f32 %v799_v54, %v785_v39 }
 0x378   :  { %v806_v46 = vld [vmem:[#allocation1 + $0x1] ss:$9 sm:$0xff] }
 0x379   :  { %807 = vrot.lane.b32.xlu0 %v806_v46, %s1208_s10  ;;  %816 = vst [vmem:[#allocation1] sm:$0xff] %v795_v44 }
 0x380   :  { %v818_v47 = vld [vmem:[#allocation1 + $0x2] ss:$9 sm:$0xff] }
 0x381   :  { %819 = vrot.lane.b32.xlu1 %v818_v47, %s1209_s1  ;;  %828 = vst [vmem:[#allocation1] sm:$0xff] %v795_v44 }
 0x388   :  { %v830_v48 = vld [vmem:[#allocation1 + $0x3] ss:$9 sm:$0xff] }
 0x389   :  { %831 = vrot.lane.b32.xlu1 %v830_v48, %s1210_s11 }
 0x3eb   :  { %v808_v50 = vpop.permute.xlu0 %807 }
 0x3ec   :  { %v810_v53 = vsel %vm802_vm4, %v808_v50, 0.0 }
 0x3ed   :  { %v812_v56 = vperm.slane %v810_v53, 0 }
 0x3ef   :  { %v814_v60 = vadd.f32 %v812_v56, %v801_v57 }
 0x3f3   :  { %v820_v52 = vpop.permute.xlu1 %819 }
 0x3f4   :  { %v822_v55 = vsel %vm815_vm5, %v820_v52, 0.0 }
 0x3f5   :  { %v824_v58 = vperm.slane %v822_v55, 0 }
 0x3f7   :  { %v826_v63 = vadd.f32 %v824_v58, %v814_v60 }
 0x3fb   :  { %v832_v61 = vpop.permute.xlu1 %831 }
 0x3fc   :  { %v834_v62 = vsel %vm827_vm6, %v832_v61, 0.0 }
 0x3fd   :  { %v836_v0 = vperm.slane %v834_v62, 0 }
 0x3ff   :  { %v838_v2 = vadd.f32 %v836_v0, %v826_v63 }
 0x401   :  { %v846_v3 = vadd.f32 %v845_v1, %v838_v2 }
 0x403   :  { %v1123_v4 = vmul.f32 -1.442695, %v846_v3 }
 0x405   :  { %1202 = vpow2.f32 %v1123_v4 }
 0x40b   :  { %v1203_v5 = vpop.eup %1202 }
 0x40c   :  { %v850_v6 = vadd.f32 1.0, %v1203_v5 }
 0x40e   :  { %1204 = vrcp.f32 %v850_v6  ;;  %v862_v10 = vand.u32 2147483648, %v850_v6  ;;  %v860_v12 = vand.u32 2147483647, %v850_v6  ;;  %vm856_vm8 = vweird.f32 %v850_v6 }
 0x410   :  { %v863_v14 = vor.u32 1.1754944e-38, %v862_v10  ;;  %vm861_vm11 = vcmp.eq.f32.partialorder %v860_v12, 8.507059e+37 }
 0x414   :  { %v1205_v7 = vpop.eup %1204 }
 0x415   :  { %v852_v8 = vmul.f32 %v1205_v7, %v850_v6  ;;  %vm857_vm7 = vweird.f32 %v1205_v7 }
 0x416   :  { %vm858_vm10 = vmor %vm856_vm8, %vm857_vm7 }
 0x417   :  { %v853_v9 = vsub.f32 1.0, %v852_v8 }
 0x419   :  { %v854_v11 = vmul.f32 %v1205_v7, %v853_v9 }
 0x41b   :  { %v855_v13 = vadd.f32 %v1205_v7, %v854_v11 }
 0x41d   :  { %v859_v15 = vsel %vm858_vm10, %v1205_v7, %v855_v13 }
 0x41e   :  { %v864_v16 = vsel %vm861_vm11, %v863_v14, %v859_v15 }
 0x41f   :  { %867 = vst.msk [vmem:[%s1562_s12 - $0x4] sm:$0x10] %vm866_vm9, %v864_v16 }

</bundles_post_ra>
